<compile_context>
chip_gen: v7x
topology: tpu7x:2x2x1
jax: 0.10.0
libtpu: 0.0.40
codegen_flags: <defaults>
</compile_context>

<pallas_src>
import functools

import jax
import jax.numpy as jnp
from jax import lax
from jax.experimental import pallas as pl
from jax.experimental.pallas import tpu as pltpu

_BN_EPS = 1e-5  # nn.BatchNorm1d default


# ---------------------------------------------------------------------------
# Fused Pallas kernel (whole network, one batch element per grid step)
# ---------------------------------------------------------------------------
def _delayed(h, shift):
    """Causally delay h (C, T) by `shift` samples along the lane (time) axis,
    shifting zeros in from the left.  Built in-register (no masked VMEM
    stores, no scratch round trip)."""
    C, T = h.shape
    if shift == 0:
        return h
    if shift >= T:
        return jnp.zeros_like(h)
    return jnp.concatenate(
        [jnp.zeros((C, shift), h.dtype), h[:, :T - shift]], axis=1)


def _gcn1d_fused_kernel(x_ref, w_ref, g_ref, b_ref, ow_ref, o_ref, *,
                        kernel_size, dilations, n_channels):
    """Whole GCN1D forward for one batch element.

    x_ref  : (1, C, T)                input (block-0 channels padded to C)
    w_ref  : (n_blocks, 3C, K*C)      stacked im2col weights per block:
                                        rows [0,2C)  -> causal conv (gate pre-act)
                                        rows [2C,3C) -> 1x1 residual (last-tap cols)
    g_ref  : (1, n_blocks, 2C, 1)     FiLM effective scale (eval-mode BN folded)
    b_ref  : (1, n_blocks, 2C, 1)     FiLM effective shift
    ow_ref : (out_ch, C)              out_net 1x1 conv weight
    o_ref  : (1, out_ch, T)           output
    """
    K = kernel_size
    C = n_channels
    T = x_ref.shape[2]

    h = x_ref[0, :, :]                                            # (C, T)

    for blk, dil in enumerate(dilations):
        # im2col tap matrix, in-register: row-block k holds the activation
        # delayed by (K-1-k)*dil samples (zeros shifted in == causal pad).
        tap = jnp.concatenate(
            [_delayed(h, (K - 1 - k) * dil) for k in range(K)], axis=0)  # (K*C, T)

        # ONE MXU matmul gives the 2C gate pre-activations AND the C
        # residual-path outputs (residual 1x1 weight sits in the last-tap cols).
        y = jnp.dot(w_ref[blk, :, :], tap,
                    preferred_element_type=jnp.float32)            # (3C, T)

        # FiLM: per-(batch, channel) scale/shift broadcast over time (lanes).
        z = y[:2 * C, :] * g_ref[0, blk, :, :] + b_ref[0, blk, :, :]  # (2C, T)

        # Gated activation (EUP) + residual add; activation stays in registers.
        h = jnp.tanh(z[:C, :]) * jax.nn.sigmoid(z[C:, :]) + y[2 * C:, :]

    # out_net: 1x1 conv (no bias) + tanh; time stays lane-dense.
    out = jnp.dot(ow_ref[...], h, preferred_element_type=jnp.float32)
    o_ref[0, :, :] = jnp.tanh(out).astype(o_ref.dtype)


# ---------------------------------------------------------------------------
# pallas_call wrapper
# ---------------------------------------------------------------------------
def gcn1d_forward(x, cond, params, *, kernel_size, dilations):
    """GCN1D.forward (NCL): x (B, in_ch, T), cond (B, cond_dim) -> (B, out_ch, T)."""
    B, in_ch, T = x.shape
    w_stack = params["w_stack"]                  # (n_blocks, 3C, K*C)
    out_w = params["out_w"]                      # (out_ch, C)
    n_blocks = w_stack.shape[0]
    out_ch, C = out_w.shape
    K = kernel_size

    # FiLM adaptor (tiny linear) + eval-mode BatchNorm folded into effective
    # per-(batch, block, channel) scale/shift, computed once in the wrapper.
    if cond is not None and "adaptor_w" in params:
        proj = jnp.einsum("bd,nod->bno", cond, params["adaptor_w"],
                          precision=lax.Precision.HIGHEST) + params["adaptor_b"]
        g, b = proj[..., :2 * C], proj[..., 2 * C:]              # (B, n_blocks, 2C)
        inv_std = lax.rsqrt(params["bn_var"] + _BN_EPS)          # (n_blocks, 2C)
        gamma = g * inv_std
        beta = b - g * (params["bn_mean"] * inv_std)
    else:
        gamma = jnp.ones((B, n_blocks, 2 * C), x.dtype)
        beta = jnp.zeros((B, n_blocks, 2 * C), x.dtype)
    gamma = gamma.reshape(B, n_blocks, 2 * C, 1).astype(x.dtype)
    beta = beta.reshape(B, n_blocks, 2 * C, 1).astype(x.dtype)

    # One-time tiny pad of block-0's input channels up to C so the stacked
    # weights and in-kernel activation have uniform shapes (padded channels
    # are zero, padded weight columns are zero -> numerics unchanged).
    if in_ch < C:
        x = jnp.pad(x, ((0, 0), (0, C - in_ch), (0, 0)))

    kernel = functools.partial(_gcn1d_fused_kernel, kernel_size=K,
                               dilations=tuple(dilations), n_channels=C)
    return pl.pallas_call(
        kernel,
        out_shape=jax.ShapeDtypeStruct((B, out_ch, T), x.dtype),
        grid_spec=pltpu.PrefetchScalarGridSpec(
            num_scalar_prefetch=0,
            grid=(B,),
            in_specs=[
                pl.BlockSpec((1, C, T), lambda bb: (bb, 0, 0)),
                # Grid-invariant parameter blocks (fetched once across steps).
                # At production channel counts: pipeline_mode=pl.Buffered(1)
                # and a bf16 boundary cast (v6e/v7x) go here.
                pl.BlockSpec((n_blocks, 3 * C, K * C), lambda bb: (0, 0, 0)),
                pl.BlockSpec((1, n_blocks, 2 * C, 1), lambda bb: (bb, 0, 0, 0)),
                pl.BlockSpec((1, n_blocks, 2 * C, 1), lambda bb: (bb, 0, 0, 0)),
                pl.BlockSpec((out_ch, C), lambda bb: (0, 0)),
            ],
            out_specs=pl.BlockSpec((1, out_ch, T), lambda bb: (bb, 0, 0)),
        ),
        compiler_params=pltpu.CompilerParams(
            dimension_semantics=("parallel",)),   # both v7x TCs get a batch elem
    )(x, w_stack, gamma, beta, out_w)


# ---------------------------------------------------------------------------
# Parameter construction (PyTorch-like uniform fan-in init)
# ---------------------------------------------------------------------------
def _build_combined_weight(conv_w, res_w, c_pad):
    """(2C, C_in, K) causal-conv weight + (C, C_in, 1) residual weight ->
    (3C, K*c_pad) im2col weight.  Input channels zero-padded to c_pad; the
    residual 1x1 weight occupies the last-tap (zero-delay) columns."""
    C2, C_in, K = conv_w.shape
    C = res_w.shape[0]
    dt = conv_w.dtype
    conv_p = jnp.pad(conv_w, ((0, 0), (0, c_pad - C_in), (0, 0)))
    conv_part = jnp.transpose(conv_p, (0, 2, 1)).reshape(C2, K * c_pad)
    res_p = jnp.pad(res_w[:, :, 0], ((0, 0), (0, c_pad - C_in)))
    res_part = jnp.concatenate(
        [jnp.zeros((C, (K - 1) * c_pad), dt), res_p], axis=1)
    return jnp.concatenate([conv_part, res_part], axis=0)


def init_gcn1d_params(key, *, in_ch, out_ch, n_channels, n_blocks,
                      kernel_size, cond_dim, dtype=jnp.float32):
    params = {"blocks": []}
    keys = jax.random.split(key, 4 * n_blocks + 1)
    w_stack, aw, ab, bn_m, bn_v = [], [], [], [], []
    for idx in range(n_blocks):
        c_in = in_ch if idx == 0 else n_channels
        c_out = n_channels
        kc, kr, kaw, kab = keys[4 * idx: 4 * idx + 4]
        b_conv = 1.0 / float(c_in * kernel_size) ** 0.5
        conv_w = jax.random.uniform(kc, (2 * c_out, c_in, kernel_size), dtype,
                                    -b_conv, b_conv)
        b_res = 1.0 / float(c_in) ** 0.5
        res_w = jax.random.uniform(kr, (c_out, c_in, 1), dtype, -b_res, b_res)
        blk = {"conv_w": conv_w, "res_w": res_w}
        w_stack.append(_build_combined_weight(conv_w, res_w, n_channels))
        if cond_dim > 0:
            b_ad = 1.0 / float(cond_dim) ** 0.5
            blk["adaptor_w"] = jax.random.uniform(
                kaw, (4 * c_out, cond_dim), dtype, -b_ad, b_ad)
            blk["adaptor_b"] = jax.random.uniform(
                kab, (4 * c_out,), dtype, -b_ad, b_ad)
            blk["bn_mean"] = jnp.zeros((2 * c_out,), dtype)
            blk["bn_var"] = jnp.ones((2 * c_out,), dtype)
            aw.append(blk["adaptor_w"]); ab.append(blk["adaptor_b"])
            bn_m.append(blk["bn_mean"]); bn_v.append(blk["bn_var"])
        params["blocks"].append(blk)
    params["w_stack"] = jnp.stack(w_stack)                 # (n_blocks, 3C, K*C)
    if cond_dim > 0:
        params["adaptor_w"] = jnp.stack(aw)                # (n_blocks, 4C, cond_dim)
        params["adaptor_b"] = jnp.stack(ab)                # (n_blocks, 4C)
        params["bn_mean"] = jnp.stack(bn_m)                # (n_blocks, 2C)
        params["bn_var"] = jnp.stack(bn_v)                 # (n_blocks, 2C)
    b_out = 1.0 / float(n_channels) ** 0.5
    params["out_w"] = jax.random.uniform(
        keys[-1], (out_ch, n_channels), dtype, -b_out, b_out)
    return params


# ---------------------------------------------------------------------------
# Pure-JAX reference mirroring the PyTorch module (eval-mode BN)
# ---------------------------------------------------------------------------
def _gcn1d_reference(x, cond, params, *, kernel_size, dilations):
    h = x
    for blk, dil in zip(params["blocks"], dilations):
        C = blk["res_w"].shape[0]
        pad = (kernel_size - 1) * dil
        hp = jnp.pad(h, ((0, 0), (0, 0), (pad, 0)))
        y = lax.conv_general_dilated(
            hp, blk["conv_w"], window_strides=(1,), padding=((0, 0),),
            rhs_dilation=(dil,), dimension_numbers=("NCH", "OIH", "NCH"),
            precision=lax.Precision.HIGHEST)
        if cond is not None and "adaptor_w" in blk:
            proj = jnp.matmul(cond, blk["adaptor_w"].T,
                              precision=lax.Precision.HIGHEST) + blk["adaptor_b"]
            g, b = proj[:, :2 * C], proj[:, 2 * C:]
            y = (y - blk["bn_mean"][None, :, None]) * lax.rsqrt(
                blk["bn_var"] + _BN_EPS)[None, :, None]
            y = y * g[:, :, None] + b[:, :, None]
        gated = jnp.tanh(y[:, :C]) * jax.nn.sigmoid(y[:, C:])
        res = jnp.einsum("oi,bit->bot", blk["res_w"][:, :, 0], h,
                         precision=lax.Precision.HIGHEST)
        h = gated + res
    out = jnp.einsum("oi,bit->bot", params["out_w"], h,
                     precision=lax.Precision.HIGHEST)
    return jnp.tanh(out)


if __name__ == "__main__":
    # Small GCN1D consistent with the module: in_ch=1, out_ch=1, n_blocks=3,
    # n_channels=8, kernel_size=3, dil_growth=2, cond_dim = NUM_IRS = 3,
    # sequence length T=128 (one full lane tile), batch=2.
    B, T = 2, 128
    in_ch, out_ch = 1, 1
    n_blocks, n_channels = 3, 8
    kernel_size, dil_growth = 3, 2
    cond_dim = 3
    dilations = tuple(dil_growth ** i for i in range(n_blocks))

    key = jax.random.PRNGKey(0)
    k_par, k_x = jax.random.split(key)
    params = init_gcn1d_params(
        k_par, in_ch=in_ch, out_ch=out_ch, n_channels=n_channels,
        n_blocks=n_blocks, kernel_size=kernel_size, cond_dim=cond_dim)
    x = jax.random.normal(k_x, (B, in_ch, T), jnp.float32)
    cond = jax.nn.one_hot(jnp.array([0, 2]), cond_dim, dtype=jnp.float32)

    fwd = jax.jit(functools.partial(
        gcn1d_forward, kernel_size=kernel_size, dilations=dilations))
    y = jax.block_until_ready(fwd(x, cond, params))

    y_ref = _gcn1d_reference(x, cond, params,
                             kernel_size=kernel_size, dilations=dilations)
    assert y.shape == (B, out_ch, T), (y.shape, (B, out_ch, T))
    max_err = float(jnp.max(jnp.abs(y - y_ref)))
    assert jnp.allclose(y, y_ref, atol=1e-4, rtol=1e-4), max_err

    print("KERNEL_OK")
</pallas_src>

<mosaic_0001>
module attributes {stable_mosaic.version = 11 : i64} {
  func.func @_gcn1d_fused_kernel(%arg0: i32, %arg1: memref<1x8x128xf32, #tpu.memory_space<vmem>>, %arg2: memref<3x24x24xf32, #tpu.memory_space<vmem>>, %arg3: memref<1x3x16x1xf32, #tpu.memory_space<vmem>>, %arg4: memref<1x3x16x1xf32, #tpu.memory_space<vmem>>, %arg5: memref<1x8xf32, #tpu.memory_space<vmem>>, %arg6: memref<1x1x128xf32, #tpu.memory_space<vmem>>) attributes {dimension_semantics = [#tpu.dimension_semantics<parallel>], iteration_bounds = array<i64: 2>, scalar_prefetch = 0 : i64, scratch_operands = 0 : i64, tpu.core_type = #tpu.core_type<tc>, window_params = [{transform_indices = @transform_0, window_bounds = array<i64: 1, 8, 128>}, {pipeline_mode = #tpu.pipeline_mode<synchronous>, transform_indices = @transform_1, window_bounds = array<i64: 3, 24, 24>}, {transform_indices = @transform_2, window_bounds = array<i64: 1, 3, 16, 1>}, {transform_indices = @transform_3, window_bounds = array<i64: 1, 3, 16, 1>}, {pipeline_mode = #tpu.pipeline_mode<synchronous>, transform_indices = @transform_4, window_bounds = array<i64: 1, 8>}, {transform_indices = @transform_5, window_bounds = array<i64: 1, 1, 128>}]} {
    %c0 = arith.constant 0 : index
    %c0_0 = arith.constant 0 : index
    %c0_1 = arith.constant 0 : index
    %0 = vector.load %arg1[%c0, %c0_0, %c0_1] : memref<1x8x128xf32, #tpu.memory_space<vmem>>, vector<1x8x128xf32>
    %1 = vector.shape_cast %0 : vector<1x8x128xf32> to vector<8x128xf32>
    %cst = arith.constant 0.000000e+00 : f32
    %2 = vector.broadcast %cst : f32 to vector<8x2xf32>
    %3 = vector.extract_strided_slice %1 {offsets = [0, 0], sizes = [8, 126], strides = [1, 1]} : vector<8x128xf32> to vector<8x126xf32>
    %4 = tpu.concatenate %2, %3 in 1 : vector<8x2xf32>, vector<8x126xf32> -> vector<8x128xf32>
    %cst_2 = arith.constant 0.000000e+00 : f32
    %5 = vector.broadcast %cst_2 : f32 to vector<8x1xf32>
    %6 = vector.extract_strided_slice %1 {offsets = [0, 0], sizes = [8, 127], strides = [1, 1]} : vector<8x128xf32> to vector<8x127xf32>
    %7 = tpu.concatenate %5, %6 in 1 : vector<8x1xf32>, vector<8x127xf32> -> vector<8x128xf32>
    %8 = tpu.concatenate %4, %7, %1 in 0 : vector<8x128xf32>, vector<8x128xf32>, vector<8x128xf32> -> vector<24x128xf32>
    %c0_3 = arith.constant 0 : index
    %c0_4 = arith.constant 0 : index
    %c0_5 = arith.constant 0 : index
    %9 = vector.load %arg2[%c0_3, %c0_4, %c0_5] : memref<3x24x24xf32, #tpu.memory_space<vmem>>, vector<1x24x24xf32>
    %10 = vector.shape_cast %9 : vector<1x24x24xf32> to vector<24x24xf32>
    %cst_6 = arith.constant dense<0.000000e+00> : vector<24x128xf32>
    %11 = tpu.matmul %10, %8, %cst_6 {dimension_numbers = #tpu.dot_dimension_numbers<[1], [0], [0], [1], [0, 0, 1, 1], [], []>} : vector<24x24xf32>, vector<24x128xf32>, vector<24x128xf32> -> vector<24x128xf32>
    %12 = vector.extract_strided_slice %11 {offsets = [0, 0], sizes = [16, 128], strides = [1, 1]} : vector<24x128xf32> to vector<16x128xf32>
    %c0_7 = arith.constant 0 : index
    %c0_8 = arith.constant 0 : index
    %c0_9 = arith.constant 0 : index
    %c0_10 = arith.constant 0 : index
    %13 = vector.load %arg3[%c0_7, %c0_8, %c0_9, %c0_10] : memref<1x3x16x1xf32, #tpu.memory_space<vmem>>, vector<1x1x16x1xf32>
    %14 = vector.shape_cast %13 : vector<1x1x16x1xf32> to vector<16x1xf32>
    %15 = vector.broadcast %14 : vector<16x1xf32> to vector<16x128xf32>
    %16 = arith.mulf %12, %15 : vector<16x128xf32>
    %c0_11 = arith.constant 0 : index
    %c0_12 = arith.constant 0 : index
    %c0_13 = arith.constant 0 : index
    %c0_14 = arith.constant 0 : index
    %17 = vector.load %arg4[%c0_11, %c0_12, %c0_13, %c0_14] : memref<1x3x16x1xf32, #tpu.memory_space<vmem>>, vector<1x1x16x1xf32>
    %18 = vector.shape_cast %17 : vector<1x1x16x1xf32> to vector<16x1xf32>
    %19 = vector.broadcast %18 : vector<16x1xf32> to vector<16x128xf32>
    %20 = arith.addf %16, %19 : vector<16x128xf32>
    %21 = vector.extract_strided_slice %20 {offsets = [0, 0], sizes = [8, 128], strides = [1, 1]} : vector<16x128xf32> to vector<8x128xf32>
    %22 = math.tanh %21 : vector<8x128xf32>
    %23 = vector.extract_strided_slice %20 {offsets = [8, 0], sizes = [8, 128], strides = [1, 1]} : vector<16x128xf32> to vector<8x128xf32>
    %24 = arith.negf %23 : vector<8x128xf32>
    %25 = math.exp %24 : vector<8x128xf32>
    %cst_15 = arith.constant 1.000000e+00 : f32
    %26 = vector.broadcast %cst_15 : f32 to vector<8x128xf32>
    %27 = arith.addf %26, %25 : vector<8x128xf32>
    %28 = arith.divf %26, %27 : vector<8x128xf32>
    %29 = arith.mulf %22, %28 : vector<8x128xf32>
    %30 = vector.extract_strided_slice %11 {offsets = [16, 0], sizes = [8, 128], strides = [1, 1]} : vector<24x128xf32> to vector<8x128xf32>
    %31 = arith.addf %29, %30 : vector<8x128xf32>
    %cst_16 = arith.constant 0.000000e+00 : f32
    %32 = vector.broadcast %cst_16 : f32 to vector<8x4xf32>
    %33 = vector.extract_strided_slice %31 {offsets = [0, 0], sizes = [8, 124], strides = [1, 1]} : vector<8x128xf32> to vector<8x124xf32>
    %34 = tpu.concatenate %32, %33 in 1 : vector<8x4xf32>, vector<8x124xf32> -> vector<8x128xf32>
    %cst_17 = arith.constant 0.000000e+00 : f32
    %35 = vector.broadcast %cst_17 : f32 to vector<8x2xf32>
    %36 = vector.extract_strided_slice %31 {offsets = [0, 0], sizes = [8, 126], strides = [1, 1]} : vector<8x128xf32> to vector<8x126xf32>
    %37 = tpu.concatenate %35, %36 in 1 : vector<8x2xf32>, vector<8x126xf32> -> vector<8x128xf32>
    %38 = tpu.concatenate %34, %37, %31 in 0 : vector<8x128xf32>, vector<8x128xf32>, vector<8x128xf32> -> vector<24x128xf32>
    %c1 = arith.constant 1 : index
    %c0_18 = arith.constant 0 : index
    %c0_19 = arith.constant 0 : index
    %39 = vector.load %arg2[%c1, %c0_18, %c0_19] : memref<3x24x24xf32, #tpu.memory_space<vmem>>, vector<1x24x24xf32>
    %40 = vector.shape_cast %39 : vector<1x24x24xf32> to vector<24x24xf32>
    %cst_20 = arith.constant dense<0.000000e+00> : vector<24x128xf32>
    %41 = tpu.matmul %40, %38, %cst_20 {dimension_numbers = #tpu.dot_dimension_numbers<[1], [0], [0], [1], [0, 0, 1, 1], [], []>} : vector<24x24xf32>, vector<24x128xf32>, vector<24x128xf32> -> vector<24x128xf32>
    %42 = vector.extract_strided_slice %41 {offsets = [0, 0], sizes = [16, 128], strides = [1, 1]} : vector<24x128xf32> to vector<16x128xf32>
    %c0_21 = arith.constant 0 : index
    %c1_22 = arith.constant 1 : index
    %c0_23 = arith.constant 0 : index
    %c0_24 = arith.constant 0 : index
    %43 = vector.load %arg3[%c0_21, %c1_22, %c0_23, %c0_24] : memref<1x3x16x1xf32, #tpu.memory_space<vmem>>, vector<1x1x16x1xf32>
    %44 = vector.shape_cast %43 : vector<1x1x16x1xf32> to vector<16x1xf32>
    %45 = vector.broadcast %44 : vector<16x1xf32> to vector<16x128xf32>
    %46 = arith.mulf %42, %45 : vector<16x128xf32>
    %c0_25 = arith.constant 0 : index
    %c1_26 = arith.constant 1 : index
    %c0_27 = arith.constant 0 : index
    %c0_28 = arith.constant 0 : index
    %47 = vector.load %arg4[%c0_25, %c1_26, %c0_27, %c0_28] : memref<1x3x16x1xf32, #tpu.memory_space<vmem>>, vector<1x1x16x1xf32>
    %48 = vector.shape_cast %47 : vector<1x1x16x1xf32> to vector<16x1xf32>
    %49 = vector.broadcast %48 : vector<16x1xf32> to vector<16x128xf32>
    %50 = arith.addf %46, %49 : vector<16x128xf32>
    %51 = vector.extract_strided_slice %50 {offsets = [0, 0], sizes = [8, 128], strides = [1, 1]} : vector<16x128xf32> to vector<8x128xf32>
    %52 = math.tanh %51 : vector<8x128xf32>
    %53 = vector.extract_strided_slice %50 {offsets = [8, 0], sizes = [8, 128], strides = [1, 1]} : vector<16x128xf32> to vector<8x128xf32>
    %54 = arith.negf %53 : vector<8x128xf32>
    %55 = math.exp %54 : vector<8x128xf32>
    %cst_29 = arith.constant 1.000000e+00 : f32
    %56 = vector.broadcast %cst_29 : f32 to vector<8x128xf32>
    %57 = arith.addf %56, %55 : vector<8x128xf32>
    %58 = arith.divf %56, %57 : vector<8x128xf32>
    %59 = arith.mulf %52, %58 : vector<8x128xf32>
    %60 = vector.extract_strided_slice %41 {offsets = [16, 0], sizes = [8, 128], strides = [1, 1]} : vector<24x128xf32> to vector<8x128xf32>
    %61 = arith.addf %59, %60 : vector<8x128xf32>
    %cst_30 = arith.constant 0.000000e+00 : f32
    %62 = vector.broadcast %cst_30 : f32 to vector<8x8xf32>
    %63 = vector.extract_strided_slice %61 {offsets = [0, 0], sizes = [8, 120], strides = [1, 1]} : vector<8x128xf32> to vector<8x120xf32>
    %64 = tpu.concatenate %62, %63 in 1 : vector<8x8xf32>, vector<8x120xf32> -> vector<8x128xf32>
    %cst_31 = arith.constant 0.000000e+00 : f32
    %65 = vector.broadcast %cst_31 : f32 to vector<8x4xf32>
    %66 = vector.extract_strided_slice %61 {offsets = [0, 0], sizes = [8, 124], strides = [1, 1]} : vector<8x128xf32> to vector<8x124xf32>
    %67 = tpu.concatenate %65, %66 in 1 : vector<8x4xf32>, vector<8x124xf32> -> vector<8x128xf32>
    %68 = tpu.concatenate %64, %67, %61 in 0 : vector<8x128xf32>, vector<8x128xf32>, vector<8x128xf32> -> vector<24x128xf32>
    %c2 = arith.constant 2 : index
    %c0_32 = arith.constant 0 : index
    %c0_33 = arith.constant 0 : index
    %69 = vector.load %arg2[%c2, %c0_32, %c0_33] : memref<3x24x24xf32, #tpu.memory_space<vmem>>, vector<1x24x24xf32>
    %70 = vector.shape_cast %69 : vector<1x24x24xf32> to vector<24x24xf32>
    %cst_34 = arith.constant dense<0.000000e+00> : vector<24x128xf32>
    %71 = tpu.matmul %70, %68, %cst_34 {dimension_numbers = #tpu.dot_dimension_numbers<[1], [0], [0], [1], [0, 0, 1, 1], [], []>} : vector<24x24xf32>, vector<24x128xf32>, vector<24x128xf32> -> vector<24x128xf32>
    %72 = vector.extract_strided_slice %71 {offsets = [0, 0], sizes = [16, 128], strides = [1, 1]} : vector<24x128xf32> to vector<16x128xf32>
    %c0_35 = arith.constant 0 : index
    %c2_36 = arith.constant 2 : index
    %c0_37 = arith.constant 0 : index
    %c0_38 = arith.constant 0 : index
    %73 = vector.load %arg3[%c0_35, %c2_36, %c0_37, %c0_38] : memref<1x3x16x1xf32, #tpu.memory_space<vmem>>, vector<1x1x16x1xf32>
    %74 = vector.shape_cast %73 : vector<1x1x16x1xf32> to vector<16x1xf32>
    %75 = vector.broadcast %74 : vector<16x1xf32> to vector<16x128xf32>
    %76 = arith.mulf %72, %75 : vector<16x128xf32>
    %c0_39 = arith.constant 0 : index
    %c2_40 = arith.constant 2 : index
    %c0_41 = arith.constant 0 : index
    %c0_42 = arith.constant 0 : index
    %77 = vector.load %arg4[%c0_39, %c2_40, %c0_41, %c0_42] : memref<1x3x16x1xf32, #tpu.memory_space<vmem>>, vector<1x1x16x1xf32>
    %78 = vector.shape_cast %77 : vector<1x1x16x1xf32> to vector<16x1xf32>
    %79 = vector.broadcast %78 : vector<16x1xf32> to vector<16x128xf32>
    %80 = arith.addf %76, %79 : vector<16x128xf32>
    %81 = vector.extract_strided_slice %80 {offsets = [0, 0], sizes = [8, 128], strides = [1, 1]} : vector<16x128xf32> to vector<8x128xf32>
    %82 = math.tanh %81 : vector<8x128xf32>
    %83 = vector.extract_strided_slice %80 {offsets = [8, 0], sizes = [8, 128], strides = [1, 1]} : vector<16x128xf32> to vector<8x128xf32>
    %84 = arith.negf %83 : vector<8x128xf32>
    %85 = math.exp %84 : vector<8x128xf32>
    %cst_43 = arith.constant 1.000000e+00 : f32
    %86 = vector.broadcast %cst_43 : f32 to vector<8x128xf32>
    %87 = arith.addf %86, %85 : vector<8x128xf32>
    %88 = arith.divf %86, %87 : vector<8x128xf32>
    %89 = arith.mulf %82, %88 : vector<8x128xf32>
    %90 = vector.extract_strided_slice %71 {offsets = [16, 0], sizes = [8, 128], strides = [1, 1]} : vector<24x128xf32> to vector<8x128xf32>
    %91 = arith.addf %89, %90 : vector<8x128xf32>
    %c0_44 = arith.constant 0 : index
    %c0_45 = arith.constant 0 : index
    %92 = vector.load %arg5[%c0_44, %c0_45] : memref<1x8xf32, #tpu.memory_space<vmem>>, vector<1x8xf32>
    %cst_46 = arith.constant dense<0.000000e+00> : vector<1x128xf32>
    %93 = tpu.matmul %92, %91, %cst_46 {dimension_numbers = #tpu.dot_dimension_numbers<[1], [0], [0], [1], [0, 0, 1, 1], [], []>} : vector<1x8xf32>, vector<8x128xf32>, vector<1x128xf32> -> vector<1x128xf32>
    %94 = math.tanh %93 : vector<1x128xf32>
    %c0_47 = arith.constant 0 : index
    %c0_48 = arith.constant 0 : index
    %c0_49 = arith.constant 0 : index
    %95 = vector.load %arg6[%c0_47, %c0_48, %c0_49] : memref<1x1x128xf32, #tpu.memory_space<vmem>>, vector<1x1x128xf32>
    %96 = vector.shape_cast %95 : vector<1x1x128xf32> to vector<1x128xf32>
    %97 = vector.shape_cast %94 : vector<1x128xf32> to vector<1x1x128xf32>
    tpu.vector_store %arg6[%c0_47, %c0_48, %c0_49], %97 {strides = array<i32>} : memref<1x1x128xf32, #tpu.memory_space<vmem>>, vector<1x1x128xf32>,
    return
  }
  func.func @transform_0(%arg0: i32) -> (i32, i32, i32) {
    %c0_i32 = arith.constant 0 : i32
    %c0_i32_0 = arith.constant 0 : i32
    %c0_i32_1 = arith.constant 0 : i32
    return %arg0, %c0_i32, %c0_i32_0 : i32, i32, i32
  }
  func.func @transform_1(%arg0: i32) -> (i32, i32, i32) {
    %c0_i32 = arith.constant 0 : i32
    %c0_i32_0 = arith.constant 0 : i32
    %c0_i32_1 = arith.constant 0 : i32
    %c0_i32_2 = arith.constant 0 : i32
    return %c0_i32, %c0_i32_0, %c0_i32_1 : i32, i32, i32
  }
  func.func @transform_2(%arg0: i32) -> (i32, i32, i32, i32) {
    %c0_i32 = arith.constant 0 : i32
    %c0_i32_0 = arith.constant 0 : i32
    %c0_i32_1 = arith.constant 0 : i32
    %c0_i32_2 = arith.constant 0 : i32
    return %arg0, %c0_i32, %c0_i32_0, %c0_i32_1 : i32, i32, i32, i32
  }
  func.func @transform_3(%arg0: i32) -> (i32, i32, i32, i32) {
    %c0_i32 = arith.constant 0 : i32
    %c0_i32_0 = arith.constant 0 : i32
    %c0_i32_1 = arith.constant 0 : i32
    %c0_i32_2 = arith.constant 0 : i32
    return %arg0, %c0_i32, %c0_i32_0, %c0_i32_1 : i32, i32, i32, i32
  }
  func.func @transform_4(%arg0: i32) -> (i32, i32) {
    %c0_i32 = arith.constant 0 : i32
    %c0_i32_0 = arith.constant 0 : i32
    %c0_i32_1 = arith.constant 0 : i32
    return %c0_i32, %c0_i32_0 : i32, i32
  }
  func.func @transform_5(%arg0: i32) -> (i32, i32, i32) {
    %c0_i32 = arith.constant 0 : i32
    %c0_i32_0 = arith.constant 0 : i32
    %c0_i32_1 = arith.constant 0 : i32
    return %arg0, %c0_i32, %c0_i32_0 : i32, i32, i32
  }
}

</mosaic_0001>

<bundles_post_ra>
// kernel: gcn1d_forward.1
= control target key start
LH: loop header
LB: loop body
LE: loop exit
PB: predicated region body
PF: predicated region fallthrough
CT: control target
= control target key end

     0   :  { %10 = vsyncpa [#allocation3], 0  ;;  %s1373_s0 = inlined_call_operand.vmem [shape: f32[2,8,128], index: 0, kind: input, shape index: {}]   ;;  %s1374_s1 = inlined_call_operand.vmem [shape: f32[3,24,24], index: 1, kind: input, shape index: {}]   ;;  %s1375_s2 = inlined_call_operand.vmem [shape: f32[2,3,16,1], index: 2, kind: input, shape index: {}]   ;;  %s1376_s3 = inlined_call_operand.vmem [shape: f32[2,3,16,1], index: 3, kind: input, shape index: {}]   ;;  %s1377_s4 = inlined_call_operand.vmem [shape: f32[1,8], index: 4, kind: input, shape index: {}]   ;;  %s1378_s5 = inlined_call_operand.hbm [shape: f32[2,1,128], index: 5, kind: output, shape index: {}]  }
   0x1   :  { %12 = vsyncpa [#allocation3 + $0x1], 0  ;;  %s1161_s18 = smov 0   ;;  %s1163_s19 = smov 0  }
   0x2   :  { %s1165_s20 = smov 0   ;;  %s1167_s21 = smov 0  }
   0x3 LB: > { %s1182_s22 = sadd.s32 4294967295, %s1120_s21   ;;  %s853_s23 = sadd.s32 4294967294, %s1120_s21   ;;  %s1120_s21 = sphi %s1167_s21, %s1388_s21   ;;  %s1116_s20 = sphi %s1165_s20, %s1387_s20   ;;  %s1112_s19 = sphi %s1163_s19, %s1386_s19   ;;  %s1108_s18 = sphi %s1161_s18, %s1385_s18  }
   0x4   : > { %s1186_s24 = sadd.s32 1, %s1120_s21   ;;  %s145_s25 = sadd.s32 1, %s1116_s20 }
   0x5   : > { %s142_s26 = ssub.s32 %s1120_s21, %s1186_s24  ;;  %p155_p0 = scmp.ne.s32.totalorder %s1116_s20, %s1112_s19 }
   0x6   : > { %p143_p1 = scmp.eq.s32.totalorder %s142_s26, 0  ;;  %p156_p2 = scmp.eq.s32.totalorder %s1182_s22, 1 }
   0x7   : > { %p161_p3 = scmp.ne.s32.totalorder %s1112_s19, %s1108_s18  ;;  %p162_p4 = scmp.eq.s32.totalorder %s853_s23, 1 }
   0x8   : > { %s1197_s27 = scalar_select %p143_p1, %s1116_s20, %s145_s25  }
   0x9   : > { %p1199_p5 = por %p156_p2, %p155_p0  ;;  %p1203_p6 = por %p162_p4, %p161_p3 }
   0xa   : > { %p856_p7 = scmp.ge.s32.totalorder %s1120_s21, 1  ;;  %p209_p8 = scmp.lt.s32.totalorder %s1120_s21, 3 }
   0xc   : > { %p210_p9 = pnand %p856_p7, %p209_p8 }
   0xd   : > { %p245_p10 = scmp.lt.s32.totalorder (!%p210_p9), %s1182_s22, 1  ;;  %v1122_v0 = vmov (!%p210_p9), 0.0|0.0   ;;  %vm1123_vm0 = vmmov (!%p210_p9), 0   ;;  %v1124_v1 = vmov (!%p210_p9), 0.0   ;;  %s1125_s11 = smov (!%p210_p9), 2   ;;  %v1127_v5 = vmov (!%p210_p9), 0  }
   0xe   : > { %213 = sbr.rel (%p210_p9) target bundleno = 1384 (0x568), region = 40  ;;  %972 = vmatprep.subr.bf16.mxu0 (!%p210_p9), %v1122_v0  ;;  %976 = vmatprep.subr.bf16.mxu1 (!%p210_p9), %v1122_v0  ;;  %s1126_s15 = smov (!%p210_p9), 1   ;;  %vm264_vm1 = vcmask (!%p210_p9), 15360   ;;  %vm269_vm2 = vcmask (!%p210_p9), 7168   ;;  %v271_v12 = vld [vmem:[%s1374_s1] sm:$0xff] (!%p210_p9)  ;;  %vm274_vm6 = vcmask (!%p210_p9), 195584  }
   0xf   : > { %928 = vmatprep.mubr.msk.f32.mxu0 (!%p210_p9), %vm1123_vm0, %v1124_v1  ;;  %943 = vmatprep.mubr.msk.f32.mxu1 (!%p210_p9), %vm1123_vm0, %v1124_v1  ;;  %vm1235_vm3 = vmneg (!%p210_p9), %vm264_vm1  ;;  %v272_v13 = vld [vmem:[%s1374_s1 + $0x8] sm:$0xff] (!%p210_p9)  ;;  %v273_v14 = vld [vmem:[%s1374_s1 + $0x10] sm:$0xff] (!%p210_p9)  ;;  %vm405_vm7 = vcmask (!%p210_p9), 31744   ;;  %s1129_s17 = smov (!%p210_p9), 8   ;;  %vm547_vm10 = vcmask (!%p210_p9), 64512  }
  0x10   : > { %1036 = vset.pattern.permute.xlu1 (!%p210_p9), %v1127_v5  ;;  %1037 = vset.pattern.permute.xlu0 (!%p210_p9), %v1127_v5  ;;  %vm862_vm4 = vmneg (!%p210_p9), %vm269_vm2  ;;  %v868_v44 = vld [vmem:[%s1374_s1 + $0x18] sm:$0xff] (!%p210_p9)  ;;  %v869_v45 = vld [vmem:[%s1374_s1 + $0x20] sm:$0xff] (!%p210_p9) }
  0x11   : > { %vm974_vm5 = vmpackc.low (!%p210_p9), %vm862_vm4, %vm1235_vm3  ;;  %v870_v46 = vld [vmem:[%s1374_s1 + $0x28] sm:$0xff] (!%p210_p9) }
  0x12   : > { %vm1267_vm8 = vmneg (!%p210_p9), %vm405_vm7 }
  0x13   : > { %vm978_vm9 = vmpackc.low (!%p210_p9), %vm1235_vm3, %vm1267_vm8 }
  0x14   : > { %vm886_vm11 = vmneg (!%p210_p9), %vm547_vm10 }
  0x15   : > { %s246_s30 = scalar_select %p245_p10, %s1182_s22, 1  ;;  %vm982_vm12 = vmpackc.low %vm1267_vm8, %vm886_vm11 }
  0x17   : > { %s857_s6 = sshll.u32 %s246_s30, 3  ;;  %s988_s10 = smul.u32 48, %s246_s30 }
  0x18   : > { %s248_s9 = scalar_lea.vmem %s1373_s0, %s857_s6 }
  0x19   : > { %v259_v2 = vld [vmem:[%s248_s9] sm:$0xff]  ;;  %s1224_s14 = scalar_lea.vmem %s1375_s2, %s988_s10  ;;  %s1229_s23 = scalar_lea.vmem %s1376_s3, %s988_s10 }
  0x1a   : > { %261 = vrot.lane.b32.xlu0 %v259_v2, %s1125_s11  ;;  %v365_v3 = vld [vmem:[%s1224_s14 + $0x8] sm:$0xff]  ;;  %v364_v4 = vld [vmem:[%s1224_s14] sm:$0xff]  ;;  %s1128_s9 = smov 4   ;;  %v881_v36 = vld [vmem:[%s1229_s23 + $0x18] sm:$0xff]  ;;  %s899_s10 = sshll.u32 %s1182_s22, 4 }
  0x1b   : > { %373 = vperm.xlu1 %1036, %v365_v3   ;;  %v379_v6 = vld [vmem:[%s1229_s23 + $0x8] sm:$0xff]  ;;  %v378_v7 = vld [vmem:[%s1229_s23] sm:$0xff]  ;;  %v879_v37 = vld [vmem:[%s1224_s14 + $0x18] sm:$0xff]  ;;  %s1331_s16 = scalar_lea.hbm %s1378_s5, %s899_s10  ;;  %s1130_s22 = smov [#allocation2]  }
  0x1c   : > { %v880_v38 = vld [vmem:[%s1229_s23 + $0x10] sm:$0xff]  ;;  %v896_v5 = vld [vmem:[%s1229_s23 + $0x28] sm:$0xff] }
  0x1d   : > { %v878_v39 = vld [vmem:[%s1224_s14 + $0x10] sm:$0xff] }
  0x1e   : > { %266 = vrot.lane.b32.xlu0 %v259_v2, %s1126_s15 }
  0x1f   : > { %387 = vperm.xlu1 %1036, %v379_v6   ;;  %v894_v6 = vld [vmem:[%s1224_s14 + $0x28] sm:$0xff] }
  0x22   : > { %368 = vperm.xlu0 %1037, %v364_v4  }
  0x23   : > { %382 = vperm.xlu1 %1036, %v378_v7   ;;  %v895_v7 = vld [vmem:[%s1229_s23 + $0x20] sm:$0xff]  ;;  %s1062_s23 = sshll.u32 %s1130_s22, 4  ;;  %s1063_s23 = int_to_ptr.vmem [resolvable:$false] %s1062_s23 }
  0x8c   : > { %v262_v8 = vpop.permute.xlu0 %261 }
  0x90   : > { %v267_v10 = vpop.permute.xlu0 %266 }
  0x91   : > { %v973_v11 = vpack.c.bf16 %v267_v10, %v262_v8  ;;  %v893_v8 = vld [vmem:[%s1224_s14 + $0x20] sm:$0xff]  ;;  %s1064_s14 = scalar_lea.vmem %s1063_s23, 32 }
  0x93   : > { %975 = vmatpush3.bf16.msk.msra.mxu0 %vm974_vm5, %v973_v11 }
  0x94   : > { %926 = vmatprep.subr.mxu0 %v1124_v1 }
  0x97   : > { %927 = vmatpush3.msra.mxu0 %v259_v2 }
  0x98   : > { %929 = vmatmul.mubr.msk.f32.vlgmr.msra.gmra.mrb[0].mxu0 %vm274_vm6, %v271_v12  ;;  %980 = vmatprep.subr.bf16.mxu0 %v1122_v0  ;;  %v883_v12 = vld [vmem:[%s1374_s1 + $0x30] sm:$0xff] }
  0x99   : > { %931 = vmatprep.mubr.msk.f32.mxu0 %vm1123_vm0, %v1124_v1 }
  0x9a   : > { %v374_v15 = vpop.permute.xlu1 %373 }
  0x9c   : > { %932 = vmatmul.mubr.msk.f32.gmra.mrb[2].mxu0 %vm274_vm6, %v272_v13  ;;  %v885_v13 = vld [vmem:[%s1374_s1 + $0x40] sm:$0xff] }
  0x9d   : > { %934 = vmatprep.mubr.msk.f32.mxu0 %vm1123_vm0, %v1124_v1 }
  0x9e   : > { %v388_v21 = vpop.permute.xlu1 %387 }
  0xa0   : > { %935 = vmatmul.mubr.msk.f32.gmra.mrb[4].mxu0 %vm274_vm6, %v273_v14  ;;  %v884_v14 = vld [vmem:[%s1374_s1 + $0x38] sm:$0xff] }
  0xa1   : > { %958 = vmatprep.mubr.msk.f32.mxu0 %vm1123_vm0, %v1124_v1  ;;  %v369_v26 = vpop.permute.xlu0 %368 }
  0xa2   : > { %v383_v28 = vpop.permute.xlu1 %382 }
 0x16b   : > { %v350_v16 = vpop.f32.mrb[0].mxu0 }
 0x16c   : > { %v930_v17 = vpop.f32.mrb[1].mxu0  ;;  %v376_v27 = vmul.f32 %v369_v26, %v350_v16 }
 0x16e   : > { %v390_v29 = vadd.f32 %v383_v28, %v376_v27 }
 0x16f   : > { %v355_v18 = vpop.f32.mrb[2].mxu0 }
 0x170   : > { %v377_v19 = vmul.f32 %v374_v15, %v355_v18  ;;  %v933_v20 = vpop.f32.mrb[3].mxu0 }
 0x172   : > { %v391_v22 = vadd.f32 %v388_v21, %v377_v19 }
 0x173   : > { %v360_v23 = vpop.f32.mrb[4].mxu0 }
 0x174   : > { %v867_v24 = vmul.f32 -1.442695, %v391_v22  ;;  %v936_v25 = vpop.f32.mrb[5].mxu0 }
 0x176   : > { %1038 = vpow2.f32 %v867_v24 }
 0x177   : > { %1040 = vtanh.f32 %v390_v29 }
 0x180   : > { %v1039_v30 = vpop.eup %1038 }
 0x181   : > { %v396_v31 = vadd.f32 1.0, %v1039_v30  ;;  %v1041_v32 = vpop.eup %1040 }
 0x183   : > { %1042 = vrcp.f32 %v396_v31 }
 0x18d   : > { %v1043_v33 = vpop.eup %1042 }
 0x18e   : > { %v399_v34 = vmul.f32 %v1043_v33, %v1041_v32 }
 0x190   : > { %v400_v35 = vadd.f32 %v399_v34, %v360_v23 }
 0x192   : > { %407 = vrot.lane.b32.xlu0 %v400_v35, %s1125_s11  ;;  %402 = vrot.lane.b32.xlu1 %v400_v35, %s1128_s9 }
 0x196   : > { %529 = vperm.xlu0 %1037, %v881_v36   ;;  %514 = vperm.xlu1 %1036, %v879_v37  }
 0x19a   : > { %524 = vperm.xlu0 %1037, %v880_v38   ;;  %509 = vperm.xlu1 %1036, %v878_v39  }
 0x204   : > { %v408_v41 = vpop.permute.xlu0 %407  ;;  %v403_v42 = vpop.permute.xlu1 %402 }
 0x205   : > { %v977_v43 = vpack.c.bf16 %v408_v41, %v403_v42 }
 0x207   : > { %979 = vmatpush3.bf16.msk.msra.mxu1 %vm978_vm9, %v977_v43 }
 0x208   : > { %941 = vmatprep.subr.mxu1 %v1124_v1 }
 0x20b   : > { %942 = vmatpush3.msra.mxu1 %v400_v35  ;;  %v685_v35 = vld [vmem:[%s1377_s4] sm:$0x1] }
 0x20c   : > { %944 = vmatmul.mubr.msk.f32.vlgmr.msra.gmra.mrb[0].mxu1 %vm274_vm6, %v868_v44  ;;  %984 = vmatprep.subr.bf16.mxu1 %v1122_v0 }
 0x20d   : > { %946 = vmatprep.mubr.msk.f32.mxu1 %vm1123_vm0, %v1124_v1 }
 0x210   : > { %947 = vmatmul.mubr.msk.f32.gmra.mrb[2].mxu1 %vm274_vm6, %v869_v45 }
 0x211   : > { %949 = vmatprep.mubr.msk.f32.mxu1 %vm1123_vm0, %v1124_v1 }
 0x214   : > { %950 = vmatmul.mubr.msk.f32.gmra.mrb[4].mxu1 %vm274_vm6, %v870_v46 }
 0x215   : > { %964 = vmatprep.mubr.msk.f32.mxu1 %vm1123_vm0, %v1124_v1  ;;  %v515_v49 = vpop.permute.xlu1 %514  ;;  %v530_v53 = vpop.permute.xlu0 %529 }
 0x219   : > { %v510_v58 = vpop.permute.xlu1 %509  ;;  %v525_v60 = vpop.permute.xlu0 %524 }
 0x2df   : > { %v490_v47 = vpop.f32.mrb[0].mxu1 }
 0x2e0   : > { %v945_v48 = vpop.f32.mrb[1].mxu1  ;;  %v517_v59 = vmul.f32 %v510_v58, %v490_v47 }
 0x2e2   : > { %v532_v61 = vadd.f32 %v525_v60, %v517_v59 }
 0x2e3   : > { %v495_v50 = vpop.f32.mrb[2].mxu1 }
 0x2e4   : > { %v518_v51 = vmul.f32 %v515_v49, %v495_v50  ;;  %v948_v52 = vpop.f32.mrb[3].mxu1 }
 0x2e6   : > { %v533_v54 = vadd.f32 %v530_v53, %v518_v51 }
 0x2e7   : > { %v500_v55 = vpop.f32.mrb[4].mxu1 }
 0x2e8   : > { %v882_v56 = vmul.f32 -1.442695, %v533_v54  ;;  %v951_v57 = vpop.f32.mrb[5].mxu1 }
 0x2ea   : > { %1044 = vpow2.f32 %v882_v56 }
 0x2eb   : > { %1046 = vtanh.f32 %v532_v61 }
 0x2f4   : > { %v1045_v62 = vpop.eup %1044 }
 0x2f5   : > { %v538_v63 = vadd.f32 1.0, %v1045_v62  ;;  %v1047_v0 = vpop.eup %1046 }
 0x2f7   : > { %1048 = vrcp.f32 %v538_v63 }
 0x301   : > { %v1049_v2 = vpop.eup %1048 }
 0x302   : > { %v541_v3 = vmul.f32 %v1049_v2, %v1047_v0 }
 0x304   : > { %v542_v4 = vadd.f32 %v541_v3, %v500_v55 }
 0x306   : > { %549 = vrot.lane.b32.xlu0 %v542_v4, %s1128_s9  ;;  %544 = vrot.lane.b32.xlu1 %v542_v4, %s1129_s17  ;;  %s243_s9 = sand.u32 1, %s1112_s19  }
 0x307   : > { %s244_s11 = scalar_lea.vmem [#allocation2], %s243_s9  ;;  %s762_s17 = scalar_lea.sflag [#allocation3], %s243_s9 }
 0x308   : > { %s774_s12 = sshll.u32 %s244_s11, 4  ;;  %s1333_s12 = int_to_ptr.vmem [resolvable:$true] %s774_s12 }
 0x309   : > { %s1058_s25 = scalar_lea.vmem %s1333_s12, 16  ;;  %p1065_p0 = scmp.lt.s32.totalorder %s1333_s12, %s1063_s23 }
 0x30a   : > { %671 = vperm.xlu0 %1037, %v896_v5   ;;  %656 = vperm.xlu1 %1036, %v894_v6   ;;  %p1059_p11 = scmp.ne.s32.totalorder %s1333_s12, %s1058_s25  ;;  %p1066_p1 = scmp.lt.s32.totalorder %s1064_s14, %s1058_s25 }
 0x30c   : > { %p1060_p12 = pnand %p1059_p11, %p1199_p5  ;;  %p1067_p2 = por %p1066_p1, %p1065_p0 }
 0x30e   : > { %666 = vperm.xlu0 %1037, %v895_v7   ;;  %651 = vperm.xlu1 %1036, %v893_v8   ;;  %p1061_p13 = pneg %p1060_p12 }
 0x310   : > { %p1068_p3 = pnand %p1067_p2, %p1061_p13 }
 0x378   : > { %v550_v9 = vpop.permute.xlu0 %549  ;;  %v545_v10 = vpop.permute.xlu1 %544 }
 0x379   : > { %v981_v11 = vpack.c.bf16 %v550_v9, %v545_v10 }
 0x37b   : > { %983 = vmatpush3.bf16.msk.msra.mxu0 %vm982_vm12, %v981_v11  ;;  %986 = vmatpush3.bf16.msk.msra.mxu1 %vm982_vm12, %v981_v11 }
 0x37c   : > { %956 = vmatprep.subr.mxu0 %v1124_v1  ;;  %985 = vmatprep.subr.mxu1 %v1124_v1 }
 0x37f   : > { %957 = vmatpush3.msra.mxu0 %v542_v4  ;;  %987 = vmatpush3.msra.mxu1 %v542_v4 }
 0x380   : > { %959 = vmatmul.mubr.msk.f32.vlgmr.msra.gmra.mrb[6].mxu0 %vm274_vm6, %v883_v12  ;;  %965 = vmatmul.mubr.msk.f32.vlgmr.msra.gmra.mrb[6].mxu1 %vm274_vm6, %v885_v13 }
 0x381   : > { %961 = vmatprep.mubr.msk.f32.mxu0 %vm1123_vm0, %v1124_v1  ;;  %967 = vmatprep.subr.mxu1 %v1124_v1 }
 0x382   : > { %969 = vmatprep.mubr.msk.f32.mxu1 %vm1123_vm0, %v1124_v1 }
 0x384   : > { %962 = vmatmul.mubr.msk.f32.gmra.mrb[8].mxu0 %vm274_vm6, %v884_v14 }
 0x389   : > { %v657_v19 = vpop.permute.xlu1 %656  ;;  %v672_v23 = vpop.permute.xlu0 %671 }
 0x38d   : > { %v652_v26 = vpop.permute.xlu1 %651  ;;  %v667_v28 = vpop.permute.xlu0 %666 }
 0x453   : > { %v632_v15 = vpop.f32.mrb[6].mxu0  ;;  %v642_v16 = vpop.f32.mrb[6].mxu1 }
 0x454   : > { %v960_v17 = vpop.f32.mrb[7].mxu0  ;;  %v966_v18 = vpop.f32.mrb[7].mxu1  ;;  %v659_v27 = vmul.f32 %v652_v26, %v632_v15 }
 0x456   : > { %v674_v29 = vadd.f32 %v667_v28, %v659_v27 }
 0x457   : > { %v637_v20 = vpop.f32.mrb[8].mxu0 }
 0x458   : > { %v660_v21 = vmul.f32 %v657_v19, %v637_v20  ;;  %v963_v22 = vpop.f32.mrb[9].mxu0 }
 0x45a   : > { %v675_v24 = vadd.f32 %v672_v23, %v660_v21 }
 0x45c   : > { %v897_v25 = vmul.f32 -1.442695, %v675_v24 }
 0x45e   : > { %1050 = vpow2.f32 %v897_v25 }
 0x45f   : > { %1052 = vtanh.f32 %v674_v29 }
 0x468   : > { %v1051_v1 = vpop.eup %1050 }
 0x469   : > { %v680_v30 = vadd.f32 1.0, %v1051_v1  ;;  %v1053_v31 = vpop.eup %1052 }
 0x46b   : > { %1054 = vrcp.f32 %v680_v30 }
 0x475   : > { %v1055_v32 = vpop.eup %1054 }
 0x476   : > { %v683_v33 = vmul.f32 %v1055_v32, %v1053_v31 }
 0x478   : > { %v684_v34 = vadd.f32 %v683_v33, %v642_v16 }
 0x47a   : > { %968 = vmatpush3.msra.mxu1 %v684_v34 }
 0x47b   : > { %970 = vmatmul.mubr.msk.f32.vlgmr.msra.gmra.mrb[8].mxu1 %vm547_vm10, %v685_v35 }
 0x54e   : > { %v755_v36 = vpop.f32.mrb[8].mxu1 }
 0x54f   : > { %1056 = vtanh.f32 %v755_v36  ;;  %v971_v37 = vpop.f32.mrb[9].mxu1 }
 0x559   : > { %v1057_v38 = vpop.eup %1056 }
 0x55a   : > { %760 = vst [vmem:[%s244_s11] sm:$0x1] %v1057_v38 }
 0x55b   : > { %1071 = shalt.err (!%p1068_p3)
}
 0x55c   : > { %s1072_s26 = scalar_lea.hbm %s1331_s16, 16  ;;  %s1076_s7 = scalar_lea.hbm %s1378_s5, 32 }
 0x55d   : > { %p1073_p4 = scmp.ne.s32.totalorder %s1331_s16, %s1072_s26  ;;  %p1077_p9 = scmp.lt.u32.totalorder %s1331_s16, %s1378_s5 }
 0x55e   : > { %p1078_p10 = scmp.lt.u32.totalorder %s1076_s7, %s1072_s26  ;;  %p1080_p12 = scmp.lt.u32.totalorder %s1072_s26, %s1331_s16 }
 0x55f   : > { %p1074_p7 = pnand %p1073_p4, %p1199_p5 }
 0x560   : > { %p1079_p11 = por %p1078_p10, %p1077_p9 }
 0x561   : > { %p1075_p8 = pneg %p1074_p7 }
 0x562   : > { %p1081_p13 = por %p1080_p12, %p1079_p11 }
 0x564   : > { %p1082_p0 = pnand %p1081_p13, %p1075_p8 }
 0x566   : > { %1085 = shalt.err (!%p1082_p0)
}
 0x567   : > { %989 = dma.vmem_to_hbm [thread:$0]  (%p1199_p5), %s1333_s12, 16, %s1331_s16, %s762_s17  }
 0x568 PF: > { %p995_p1 = scmp.ge.s32.totalorder %s1120_s21, 2  ;;  %s786_s10 = sand.u32 1, %s1108_s18  }
 0x569   : > { %s787_s11 = scalar_lea.sflag [#allocation3], %s786_s10 }
 0x56a   : > { %p992_p2 = pnand %p995_p1, %p1203_p6 }
 0x56c   : > { %1103 = dma.done.wait (!%p992_p2), %s787_s11, 16  }
 0x56d   : > { %1105 = vsyncadd (!%p992_p2), %s787_s11, 4294967280  ;;  %p15_p3 = scmp.ge.s32.totalorder %s1186_s24, 4   ;;  %s1385_s18 = smov %s1112_s19 }
 0x56e   : > { %s1386_s19 = smov %s1116_s20  ;;  %s1387_s20 = smov %s1197_s27 }
 0x56f   : > { %s1388_s21 = smov %s1186_s24  ;;  %17 = sbr.rel (!%p15_p3) target bundleno = 3 (0x3), region = 87 }
 0x576   :  { %791 = vsyncpa [#allocation3], 1 }
 0x577   :  { %793 = vsyncpa [#allocation3 + $0x1], 1 }

</bundles_post_ra>
